<compile_context>
chip_gen: v7x
topology: tpu7x:2x2x1
jax: 0.10.0
libtpu: 0.0.40
codegen_flags: <defaults>
</compile_context>

<pallas_src>
import functools
import math

import jax
import jax.numpy as jnp
from jax import lax
from jax.experimental import pallas as pl
from jax.experimental.pallas import tpu as pltpu


# ----------------------------------------------------------------------------
# helpers
# ----------------------------------------------------------------------------
def _round_up(x, m):
    return ((x + m - 1) // m) * m


def _vmem_limit(block_bytes):
    """Scoped-VMEM limit: None when the default suffices, else a per-chip cap."""
    need = int(2.2 * block_bytes)            # BlockSpec double-buffers each operand
    if need <= 16 * 1024 * 1024:             # fits the smallest default
        return None
    try:
        cap = pltpu.get_tpu_info().vmem_capacity_bytes
    except Exception:                        # pragma: no cover - conservative fallback
        cap = 64 * 1024 * 1024
    return max(32 * 1024 * 1024, min(need, int(cap * 0.85)))


def _choose_q_tile(seq, target):
    """Largest multiple-of-8 divisor of `seq` that is <= target (else full seq)."""
    if seq <= target:
        return seq
    top = (min(target, seq) // 8) * 8
    for cand in range(top, 7, -8):
        if seq % cand == 0:
            return cand
    return seq


# ----------------------------------------------------------------------------
# Kernel 1: row-tiled dense layer  y = x @ Wt + b
#   used for (a) fused QKV projection, (b) path-embedding linear (no bias).
# ----------------------------------------------------------------------------
def _linear_kernel(x_ref, wt_ref, b_ref, o_ref):
    # bf16 inputs go straight to the bf16 MXU path; accumulation is f32.
    y = jnp.dot(x_ref[...], wt_ref[...], preferred_element_type=jnp.float32)
    y = y + b_ref[...].astype(jnp.float32)
    o_ref[...] = y.astype(o_ref.dtype)


def linear_rows(x2d, wt, b=None, *, row_block=256, out_dtype=None):
    """x2d: (rows, din), wt: (din, dout) pre-transposed, b: (dout,) or None."""
    rows, din = x2d.shape
    dout = wt.shape[1]
    out_dtype = out_dtype if out_dtype is not None else x2d.dtype

    wt = wt.astype(x2d.dtype)                # weight streamed at activation dtype
    b2 = (jnp.zeros((1, dout), jnp.float32) if b is None
          else b.reshape(1, dout).astype(jnp.float32))

    rb = min(int(row_block), _round_up(rows, 8))
    rb = max(8, (rb // 8) * 8)
    padded_rows = _round_up(rows, rb)
    xp = x2d if padded_rows == rows else jnp.pad(
        x2d, ((0, padded_rows - rows), (0, 0)))

    itm = jnp.dtype(x2d.dtype).itemsize
    oit = jnp.dtype(out_dtype).itemsize
    working = rb * din * itm + din * dout * itm + dout * 4 + rb * dout * oit
    # TODO(synk): for very large hidden on v7x, add a dout tile and
    # pipeline_mode=pl.Buffered(1) on the constant weight block.

    out = pl.pallas_call(
        _linear_kernel,
        out_shape=jax.ShapeDtypeStruct((padded_rows, dout), out_dtype),
        grid_spec=pltpu.PrefetchScalarGridSpec(
            num_scalar_prefetch=0,
            grid=(padded_rows // rb,),
            in_specs=[
                pl.BlockSpec((rb, din), lambda i: (i, 0)),
                pl.BlockSpec((din, dout), lambda i: (0, 0)),
                pl.BlockSpec((1, dout), lambda i: (0, 0)),
            ],
            out_specs=pl.BlockSpec((rb, dout), lambda i: (i, 0)),
        ),
        compiler_params=pltpu.CompilerParams(
            dimension_semantics=("parallel",),
            vmem_limit_bytes=_vmem_limit(working)),
    )(xp, wt, b2)

    return out if padded_rows == rows else out[:rows]


# ----------------------------------------------------------------------------
# Kernel 2: fused bias + attention core, per (batch, q-tile), all heads
# ----------------------------------------------------------------------------
def _make_fused_attn_kernel(H, Dh, scale, has_rw, has_arw, want_probs):
    dn_contract_last = (((1,), (1,)), ((), ()))   # (q,c)x(k,c)->(q,k) : no transpose
    dn_pv = (((1,), (0,)), ((), ()))              # (q,k)x(k,d)->(q,d)

    def kernel(*refs):
        it = iter(refs)
        q_ref, k_ref, v_ref, dist_ref, mask_ref = (next(it) for _ in range(5))
        wvec_ref = next(it) if (has_rw or has_arw) else None
        rwq_ref = rwk_ref = arwq_ref = arwk_ref = None
        if has_rw:
            rwq_ref, rwk_ref = next(it), next(it)
        if has_arw:
            arwq_ref, arwk_ref = next(it), next(it)
        ctx_ref = next(it)
        probs_ref = next(it) if want_probs else None

        mask = mask_ref[0].astype(jnp.float32)               # (1, S) -> broadcast
        rw_q = rwq_ref[0] if has_rw else None                # (Tq, hidden) f32
        rw_k = rwk_ref[0] if has_rw else None                # (S,  hidden) f32
        arw_q = arwq_ref[0] if has_arw else None
        arw_k = arwk_ref[0] if has_arw else None

        for h in range(H):
            q_h = q_ref[0, h]                                # (Tq, Dh)
            k_h = k_ref[0, h]                                # (S,  Dh)
            s = lax.dot_general(q_h, k_h, dn_contract_last,
                                preferred_element_type=jnp.float32) * scale
            s = s + dist_ref[0, h].astype(jnp.float32)       # head-mixed dist + bias_b
            if has_rw or has_arw:
                w_h = wvec_ref[h:h + 1, :]                   # (1, hidden)
                if has_rw:
                    s = s + lax.dot_general(rw_q * w_h, rw_k, dn_contract_last,
                                            preferred_element_type=jnp.float32)
                if has_arw:
                    s = s + lax.dot_general(arw_q * w_h, arw_k, dn_contract_last,
                                            preferred_element_type=jnp.float32)
            s = s + mask                                      # additive key mask

            m = jnp.max(s, axis=-1, keepdims=True)
            e = jnp.exp(s - m)
            # exact reciprocal (approx=True left off to preserve tight tolerances)
            p = e * pl.reciprocal(jnp.sum(e, axis=-1, keepdims=True), approx=False)
            # attention-probs dropout is identity at inference.
            if want_probs:
                probs_ref[0, h] = p.astype(probs_ref.dtype)
            ctx_h = lax.dot_general(p.astype(v_ref.dtype), v_ref[0, h], dn_pv,
                                    preferred_element_type=jnp.float32)
            # write directly into the (Tq, hidden) lane-dense output block
            ctx_ref[0, :, h * Dh:(h + 1) * Dh] = ctx_h.astype(ctx_ref.dtype)

    return kernel


def fused_attention(q_bhsd, k_bhsd, v_bhsd, dist_bhss, mask_b1s,
                    wvec, rw_flat, arw_flat, *, scale, want_probs,
                    out_dtype, q_block=128):
    B, H, S, Dh = q_bhsd.shape
    hidden = H * Dh
    tq = _choose_q_tile(S, q_block)
    n_qt = S // tq
    has_rw = rw_flat is not None
    has_arw = arw_flat is not None

    kernel = _make_fused_attn_kernel(H, Dh, scale, has_rw, has_arw, want_probs)

    in_specs = [
        pl.BlockSpec((1, H, tq, Dh), lambda b, t: (b, 0, t, 0)),   # Q (q-tiled)
        pl.BlockSpec((1, H, S, Dh), lambda b, t: (b, 0, 0, 0)),    # K (full S)
        pl.BlockSpec((1, H, S, Dh), lambda b, t: (b, 0, 0, 0)),    # V (full S)
        pl.BlockSpec((1, H, tq, S), lambda b, t: (b, 0, t, 0)),    # mixed dist (+bias_b)
        pl.BlockSpec((1, 1, S), lambda b, t: (b, 0, 0)),           # additive mask
    ]
    args = [q_bhsd, k_bhsd, v_bhsd, dist_bhss, mask_b1s]
    if has_rw or has_arw:
        in_specs.append(pl.BlockSpec((H, hidden), lambda b, t: (0, 0)))
        args.append(wvec)
    for flat in (rw_flat, arw_flat):
        if flat is not None:
            in_specs.append(pl.BlockSpec((1, tq, hidden), lambda b, t: (b, t, 0)))
            in_specs.append(pl.BlockSpec((1, S, hidden), lambda b, t: (b, 0, 0)))
            args.extend([flat, flat])

    out_shapes = [jax.ShapeDtypeStruct((B, S, hidden), out_dtype)]
    out_specs = [pl.BlockSpec((1, tq, hidden), lambda b, t: (b, t, 0))]
    if want_probs:
        out_shapes.append(jax.ShapeDtypeStruct((B, H, S, S), jnp.float32))
        out_specs.append(pl.BlockSpec((1, H, tq, S), lambda b, t: (b, 0, t, 0)))

    # per-step VMEM block footprint estimate (for the scoped-VMEM limit)
    qit = jnp.dtype(q_bhsd.dtype).itemsize
    oit = jnp.dtype(out_dtype).itemsize
    blk = (H * tq * Dh * qit + 2 * H * S * Dh * qit + H * tq * S * 4 + S * 4
           + tq * hidden * oit)
    if has_rw or has_arw:
        blk += H * hidden * 4
    blk += (int(has_rw) + int(has_arw)) * (tq + S) * hidden * 4
    if want_probs:
        blk += H * tq * S * 4

    outs = pl.pallas_call(
        kernel,
        out_shape=tuple(out_shapes) if want_probs else out_shapes[0],
        grid_spec=pltpu.PrefetchScalarGridSpec(
            num_scalar_prefetch=0,
            grid=(B, n_qt),
            in_specs=in_specs,
            out_specs=tuple(out_specs) if want_probs else out_specs[0],
        ),
        compiler_params=pltpu.CompilerParams(
            dimension_semantics=("parallel", "parallel"),
            vmem_limit_bytes=_vmem_limit(blk)),
    )(*args)

    if want_probs:
        return outs[0], outs[1]
    return outs, None


# ----------------------------------------------------------------------------
# Full forward pass
# ----------------------------------------------------------------------------
def protein_sge_self_attention(hidden_states, attention_mask, distance,
                               random_walk=None, anonymous_random_walk=None,
                               *, params, config, row_block=256, q_block=128):
    B, S, hidden = hidden_states.shape
    H = config["num_attention_heads"]
    Dh = hidden // H
    dtype = hidden_states.dtype

    # ---- fused Q/K/V projection (one Pallas matmul, one weight + one bias) --
    wqkv_t = jnp.concatenate(
        [params["wq"].T, params["wk"].T, params["wv"].T], axis=1)  # (hidden, 3h)
    bqkv = jnp.concatenate([params["bq"], params["bk"], params["bv"]])
    qkv = linear_rows(hidden_states.reshape(B * S, hidden), wqkv_t, bqkv,
                      row_block=row_block, out_dtype=dtype)
    q2, k2, v2 = jnp.split(qkv, 3, axis=1)

    def split_heads(x2d):     # (B*S, hidden) -> (B, H, S, Dh)
        return x2d.reshape(B, S, H, Dh).transpose(0, 2, 1, 3)

    q_bhsd, k_bhsd, v_bhsd = split_heads(q2), split_heads(k2), split_heads(v2)

    # ---- attention bias with the H->H head-mixing linear folded --------------
    # mixed_table[idx, h] = beta * sum_g dist_emb[idx, g] * bias_w[h, g] + bias_b[h]
    mixed_table = (float(config["beta"]) * (params["dist_emb"] @ params["bias_w"].T)
                   + params["bias_b"][None, :]).astype(jnp.float32)
    # TODO(synk): embedding lookups are data-dependent gathers; they stay in the
    # XLA wrapper (jnp.take) rather than inside a Pallas kernel.
    dist_bhss = jnp.moveaxis(jnp.take(mixed_table, distance + 1, axis=0), -1, 1)
    dist_bhss = dist_bhss.astype(jnp.float32)                      # (B, H, S, S)

    has_rw = random_walk is not None
    has_arw = anonymous_random_walk is not None

    def path_mean(walk):
        e = jnp.take(params["node_emb"], walk, axis=0)             # (B,S,W,L,hidden)
        return e.mean(axis=(2, 3)).reshape(B * S, hidden).astype(jnp.float32)

    rw_flat = arw_flat = wvec = None
    if has_rw or has_arw:
        # wvec[h, g*Dh + d] = bias_w[h, g] so that, per head h,
        #   sum_g bias_w[h,g] * (rw_g @ rw_g^T) == (rw_flat * wvec[h]) @ rw_flat^T
        wvec = jnp.repeat(params["bias_w"], Dh, axis=1).astype(jnp.float32)
        means = []
        if has_rw:
            means.append(path_mean(random_walk))
        if has_arw:
            means.append(path_mean(anonymous_random_walk))
        # one Pallas matmul for both walk projections (stacked along rows)
        proj = linear_rows(jnp.concatenate(means, axis=0), params["path_w"].T,
                           None, row_block=row_block, out_dtype=jnp.float32)
        chunks = jnp.split(proj, len(means), axis=0)
        if has_rw:
            rw_flat = chunks[0].reshape(B, S, hidden)
        if has_arw:
            arw_flat = chunks[-1].reshape(B, S, hidden)

    # key-only additive mask (B,1,1,S) -> (B,1,S); added inside the kernel.
    mask_b1s = attention_mask.reshape(B, 1, S).astype(jnp.float32)

    want_probs = bool(config.get("output_attentions", False))
    context, probs = fused_attention(
        q_bhsd, k_bhsd, v_bhsd, dist_bhss, mask_b1s, wvec, rw_flat, arw_flat,
        scale=1.0 / math.sqrt(Dh), want_probs=want_probs, out_dtype=dtype,
        q_block=q_block)

    if want_probs:
        return context, probs
    return (context,)


# ----------------------------------------------------------------------------
# Parameters (deterministic synthetic init, PyTorch-like layout/scales)
# ----------------------------------------------------------------------------
def init_params(key, config):
    hidden = config["hidden_size"]
    H = config["num_attention_heads"]
    vocab = config["vocab_size"]
    max_pos = config["max_position_embeddings"]
    ks = jax.random.split(key, 11)
    bound_h = 1.0 / math.sqrt(hidden)
    bound_a = 1.0 / math.sqrt(H)

    def unif(k, shape, bound):
        return jax.random.uniform(k, shape, jnp.float32, -bound, bound)

    node_emb = 0.1 * jax.random.normal(ks[8], (vocab, hidden), jnp.float32)
    node_emb = node_emb.at[0].set(0.0)            # padding_idx = 0
    dist_emb = 0.1 * jax.random.normal(ks[9], (max_pos, H), jnp.float32)
    dist_emb = dist_emb.at[0].set(0.0)            # padding_idx = 0

    return {
        "wq": unif(ks[0], (hidden, hidden), bound_h),
        "bq": unif(ks[1], (hidden,), bound_h),
        "wk": unif(ks[2], (hidden, hidden), bound_h),
        "bk": unif(ks[3], (hidden,), bound_h),
        "wv": unif(ks[4], (hidden, hidden), bound_h),
        "bv": unif(ks[5], (hidden,), bound_h),
        "path_w": unif(ks[6], (hidden, hidden), bound_h),   # Linear, no bias
        "bias_w": unif(ks[7], (H, H), bound_a),
        "bias_b": unif(ks[10], (H,), bound_a),
        "node_emb": node_emb,
        "dist_emb": dist_emb,
    }


# ----------------------------------------------------------------------------
# Pure-JAX reference (mirrors the PyTorch forward exactly)
# ----------------------------------------------------------------------------
def _reference(hidden_states, attention_mask, distance, random_walk,
               anonymous_random_walk, params, config):
    B, S, hidden = hidden_states.shape
    H = config["num_attention_heads"]
    Dh = hidden // H

    def split(x):
        return x.reshape(B, S, H, Dh).transpose(0, 2, 1, 3)

    q = split(hidden_states @ params["wq"].T + params["bq"])
    k = split(hidden_states @ params["wk"].T + params["bk"])
    v = split(hidden_states @ params["wv"].T + params["bv"])
    scores = jnp.einsum("bhqd,bhkd->bhqk", q, k) / math.sqrt(Dh)

    dist_rpe = jnp.transpose(params["dist_emb"][distance + 1], (0, 3, 1, 2))
    bias = dist_rpe * config["beta"]

    def path_emb(walk):
        e = params["node_emb"][walk].mean(axis=(2, 3))
        return split(e @ params["path_w"].T)

    if random_walk is not None:
        rw = path_emb(random_walk)
        bias = bias + jnp.einsum("bhqd,bhkd->bhqk", rw, rw)
    if anonymous_random_walk is not None:
        arw = path_emb(anonymous_random_walk)
        bias = bias + jnp.einsum("bhqd,bhkd->bhqk", arw, arw)

    bias = jnp.transpose(bias, (0, 2, 3, 1)) @ params["bias_w"].T + params["bias_b"]
    bias = jnp.transpose(bias, (0, 3, 1, 2))

    scores = scores + bias + attention_mask
    probs = jax.nn.softmax(scores, axis=-1)
    ctx = jnp.einsum("bhqk,bhkd->bhqd", probs, v)
    ctx = ctx.transpose(0, 2, 1, 3).reshape(B, S, hidden)
    return ctx, probs


if __name__ == "__main__":
    config = dict(
        vocab_size=16, hidden_size=32, num_attention_heads=4,
        max_position_embeddings=10, beta=0.5,
        attention_probs_dropout_prob=0.0, output_attentions=True)
    B, S = 2, 8
    W, L = 3, 5     # walks per node, walk length

    key = jax.random.PRNGKey(0)
    kh, kd, kr, ka, kp = jax.random.split(key, 5)

    hidden_states = jax.random.normal(kh, (B, S, config["hidden_size"]), jnp.float32)
    distance = jax.random.randint(
        kd, (B, S, S), 0, config["max_position_embeddings"] - 1)
    random_walk = jax.random.randint(kr, (B, S, W, L), 0, config["vocab_size"])
    anonymous_random_walk = jax.random.randint(
        ka, (B, S, W, L), 0, config["vocab_size"])
    attention_mask = jnp.zeros((B, 1, 1, S), jnp.float32)
    attention_mask = attention_mask.at[1, :, :, S - 2:].set(-10000.0)

    params = init_params(kp, config)

    context, probs = protein_sge_self_attention(
        hidden_states, attention_mask, distance,
        random_walk, anonymous_random_walk,
        params=params, config=config)
    context = jax.block_until_ready(context)
    probs = jax.block_until_ready(probs)

    ref_ctx, ref_probs = _reference(hidden_states, attention_mask, distance,
                                    random_walk, anonymous_random_walk,
                                    params, config)
    assert context.shape == (B, S, config["hidden_size"])
    assert probs.shape == (B, config["num_attention_heads"], S, S)
    assert jnp.allclose(context, ref_ctx, atol=2e-4, rtol=2e-4), "context mismatch"
    assert jnp.allclose(probs, ref_probs, atol=2e-4, rtol=2e-4), "probs mismatch"

    print("KERNEL_OK")
</pallas_src>

<mosaic_0001>
module attributes {stable_mosaic.version = 11 : i64} {
  func.func @_linear_kernel(%arg0: i32, %arg1: memref<16x32xf32, #tpu.memory_space<vmem>>, %arg2: memref<32x96xf32, #tpu.memory_space<vmem>>, %arg3: memref<1x96xf32, #tpu.memory_space<vmem>>, %arg4: memref<16x96xf32, #tpu.memory_space<vmem>>) attributes {dimension_semantics = [#tpu.dimension_semantics<parallel>], iteration_bounds = array<i64: 1>, scalar_prefetch = 0 : i64, scratch_operands = 0 : i64, tpu.core_type = #tpu.core_type<tc>, window_params = [{transform_indices = @transform_0, window_bounds = array<i64: 16, 32>}, {pipeline_mode = #tpu.pipeline_mode<synchronous>, transform_indices = @transform_1, window_bounds = array<i64: 32, 96>}, {pipeline_mode = #tpu.pipeline_mode<synchronous>, transform_indices = @transform_2, window_bounds = array<i64: 1, 96>}, {transform_indices = @transform_3, window_bounds = array<i64: 16, 96>}]} {
    %c0 = arith.constant 0 : index
    %c0_0 = arith.constant 0 : index
    %0 = vector.load %arg1[%c0, %c0_0] : memref<16x32xf32, #tpu.memory_space<vmem>>, vector<16x32xf32>
    %c0_1 = arith.constant 0 : index
    %c0_2 = arith.constant 0 : index
    %1 = vector.load %arg2[%c0_1, %c0_2] : memref<32x96xf32, #tpu.memory_space<vmem>>, vector<32x96xf32>
    %cst = arith.constant dense<0.000000e+00> : vector<16x96xf32>
    %2 = tpu.matmul %0, %1, %cst {dimension_numbers = #tpu.dot_dimension_numbers<[1], [0], [0], [1], [0, 0, 1, 1], [], []>} : vector<16x32xf32>, vector<32x96xf32>, vector<16x96xf32> -> vector<16x96xf32>
    %c0_3 = arith.constant 0 : index
    %c0_4 = arith.constant 0 : index
    %3 = vector.load %arg3[%c0_3, %c0_4] : memref<1x96xf32, #tpu.memory_space<vmem>>, vector<1x96xf32>
    %4 = vector.broadcast %3 : vector<1x96xf32> to vector<16x96xf32>
    %5 = arith.addf %2, %4 : vector<16x96xf32>
    %c0_5 = arith.constant 0 : index
    %c0_6 = arith.constant 0 : index
    %6 = vector.load %arg4[%c0_5, %c0_6] : memref<16x96xf32, #tpu.memory_space<vmem>>, vector<16x96xf32>
    tpu.vector_store %arg4[%c0_5, %c0_6], %5 {strides = array<i32>} : memref<16x96xf32, #tpu.memory_space<vmem>>, vector<16x96xf32>,
    return
  }
  func.func @transform_0(%arg0: i32) -> (i32, i32) {
    %c0_i32 = arith.constant 0 : i32
    %c0_i32_0 = arith.constant 0 : i32
    return %arg0, %c0_i32 : i32, i32
  }
  func.func @transform_1(%arg0: i32) -> (i32, i32) {
    %c0_i32 = arith.constant 0 : i32
    %c0_i32_0 = arith.constant 0 : i32
    %c0_i32_1 = arith.constant 0 : i32
    return %c0_i32, %c0_i32_0 : i32, i32
  }
  func.func @transform_2(%arg0: i32) -> (i32, i32) {
    %c0_i32 = arith.constant 0 : i32
    %c0_i32_0 = arith.constant 0 : i32
    %c0_i32_1 = arith.constant 0 : i32
    return %c0_i32, %c0_i32_0 : i32, i32
  }
  func.func @transform_3(%arg0: i32) -> (i32, i32) {
    %c0_i32 = arith.constant 0 : i32
    %c0_i32_0 = arith.constant 0 : i32
    return %arg0, %c0_i32 : i32, i32
  }
}

</mosaic_0001>

<bundles_post_ra>
// kernel: tpu_custom_call.1
= control target key start
LH: loop header
LB: loop body
LE: loop exit
PB: predicated region body
PF: predicated region fallthrough
CT: control target
= control target key end

     0   :  { %8 = vsyncpa [#allocation3], 0  ;;  %s337_s0 = inlined_call_operand.hbm [shape: f32[16,32], index: 0, kind: input, shape index: {}]   ;;  %s338_s1 = inlined_call_operand.hbm [shape: f32[32,96], index: 1, kind: input, shape index: {}]   ;;  %s339_s2 = inlined_call_operand.vmem [shape: f32[1,96], index: 2, kind: input, shape index: {}]   ;;  %s340_s3 = inlined_call_operand.hbm [shape: f32[16,96], index: 3, kind: output, shape index: {}]  }
   0x1   :  { %9 = vsyncpa [#allocation6], 0 }
   0x2   :  { %10 = vsyncpa [#allocation4], 0  ;;  %s264_s12 = smov [#allocation2]   ;;  %s192_s16 = scalar_lea.hbm %s337_s0, 256 }
   0x3   :  { %s16_s13 = sshll.u32 %s264_s12, 4  ;;  %p193_p0 = scmp.ne.s32.totalorder %s337_s0, %s192_s16  ;;  %s17_s13 = int_to_ptr.vmem [resolvable:$true] %s16_s13 }
   0x4   :  { %p196_p1 = scmp.lt.u32.totalorder %s192_s16, %s337_s0 }
   0x6   :  { %p198_p2 = pnand %p196_p1, %p193_p0 }
   0x8   :  { %201 = shalt.err (!%p198_p2)
}
   0x9   :  { %s202_s21 = scalar_lea.vmem %s17_s13, 256  ;;  %p207_p4 = scmp.lt.s32.totalorder %s17_s13, %s17_s13 }
   0xa   :  { %p203_p3 = scmp.ne.s32.totalorder %s17_s13, %s202_s21  ;;  %p208_p5 = scmp.lt.s32.totalorder %s202_s21, %s202_s21 }
   0xc   :  { %p209_p6 = por %p208_p5, %p207_p4 }
   0xe   :  { %p210_p7 = pnand %p209_p6, %p203_p3 }
  0x10   :  { %213 = shalt.err (!%p210_p7)
}
  0x11   :  { %s265_s22 = smov 128   ;;  %s266_s23 = smov 8  }
  0x12   :  { %22 = dma.hbm_to_vmem [thread:$0]  %s337_s0, 256, %s17_s13, [#allocation3], %s265_s22, %s265_s22, %s266_s23  }
  0x13   :  { %s267_s26 = smov [#allocation5]   ;;  %s214_s30 = scalar_lea.hbm %s338_s1, 512 }
  0x14   :  { %s28_s27 = sshll.u32 %s267_s26, 4  ;;  %p215_p8 = scmp.ne.s32.totalorder %s338_s1, %s214_s30  ;;  %s29_s27 = int_to_ptr.vmem [resolvable:$true] %s28_s27 }
  0x15   :  { %p218_p9 = scmp.lt.u32.totalorder %s214_s30, %s338_s1 }
  0x17   :  { %p220_p10 = pnand %p218_p9, %p215_p8 }
  0x19   :  { %223 = shalt.err (!%p220_p10)
}
  0x1a   :  { %s224_s8 = scalar_lea.vmem %s29_s27, 512  ;;  %p229_p12 = scmp.lt.s32.totalorder %s29_s27, %s29_s27 }
  0x1b   :  { %p225_p11 = scmp.ne.s32.totalorder %s29_s27, %s224_s8  ;;  %p230_p13 = scmp.lt.s32.totalorder %s224_s8, %s224_s8 }
  0x1d   :  { %p231_p0 = por %p230_p13, %p229_p12 }
  0x1f   :  { %p232_p1 = pnand %p231_p0, %p225_p11 }
  0x21   :  { %235 = shalt.err (!%p232_p1)
}
  0x22   :  { %34 = dma.hbm_to_vmem [thread:$0]  %s338_s1, 512, %s29_s27, [#allocation6], %s265_s22, %s265_s22, %s266_s23  }
  0x23   :  { %258 = dma.done.wait [#allocation3], 256  }
  0x24   :  { %259 = vsyncadd [#allocation3], 4294967040 }
  0x25   :  { %260 = dma.done.wait [#allocation6], 512  }
  0x26   :  { %261 = vsyncadd [#allocation6], 4294966784  ;;  %vm56_vm0 = vcmask 261120   ;;  %v45_v0 = vld [vmem:[#allocation5] sm:$0xff]  ;;  %v46_v1 = vld [vmem:[#allocation5 + $0x8] sm:$0xff]  ;;  %s268_s11 = smov [#allocation7]  }
  0x27   :  { %v47_v2 = vld [vmem:[#allocation5 + $0x10] sm:$0xff]  ;;  %v179_v3 = vpack.c.bf16 %v46_v1, %v45_v0  ;;  %v48_v4 = vld [vmem:[#allocation5 + $0x18] sm:$0xff]  ;;  %s146_s12 = sshll.u32 %s268_s11, 4  ;;  %vm138_vm1 = vcmask 785408   ;;  %s147_s12 = int_to_ptr.vmem [resolvable:$true] %s146_s12 }
  0x28   :  { %v43_v5 = vld [vmem:[#allocation2] sm:$0xff]  ;;  %v183_v6 = vpack.c.bf16 %v48_v4, %v47_v2  ;;  %v44_v7 = vld [vmem:[#allocation2 + $0x8] sm:$0xff]  ;;  %s236_s13 = scalar_lea.vmem %s147_s12, 256  ;;  %p241_p3 = scmp.lt.s32.totalorder %s147_s12, %s147_s12 }
  0x29   :  { %176 = vmatprep.mubr.msk.f32.mxu0 %vm56_vm0, %v43_v5  ;;  %180 = vmatprep.subr.bf16.mxu0 %v179_v3  ;;  %v159_v8 = vld [vmem:[%s339_s2] ss:$0 sm:$0xff]  ;;  %p237_p2 = scmp.ne.s32.totalorder %s147_s12, %s236_s13  ;;  %p242_p4 = scmp.lt.s32.totalorder %s236_s13, %s236_s13 }
  0x2a   :  { %182 = vmatpush3.bf16.msra.mxu0 %v179_v3 }
  0x2b   :  { %184 = vmatprep.subr.bf16.mxu0 %v183_v6  ;;  %p243_p5 = por %p242_p4, %p241_p3 }
  0x2d   :  { %p244_p6 = pnand %p243_p5, %p237_p2 }
  0x2e   :  { %186 = vmatpush3.bf16.msra.mxu0 %v183_v6 }
  0x31   :  { %177 = vmatmul.mubr.msk.f32.vlgmr.msra.gmra.mrb[0].mxu0 %vm56_vm0, %v44_v7 }
 0x104   :  { %v178_v9 = vpop.f32.mrb[0].mxu0 }
 0x105   :  { %v135_v10 = vadd.f32 %v178_v9, %v159_v8  ;;  %v129_v11 = vpop.f32.mrb[1].mxu0 }
 0x106   :  { %v130_v12 = vadd.f32 %v159_v8, %v129_v11 }
 0x107   :  { %140 = vst.msk [vmem:[#allocation7 + $0x8] sm:$0xff] %vm138_vm1, %v135_v10 }
 0x108   :  { %139 = vst.msk [vmem:[#allocation7] sm:$0xff] %vm138_vm1, %v130_v12 }
 0x109   :  { %247 = shalt.err (!%p244_p6)
}
 0x10a   :  { %s248_s2 = scalar_lea.hbm %s340_s3, 256 }
 0x10b   :  { %p249_p7 = scmp.ne.s32.totalorder %s340_s3, %s248_s2  ;;  %p252_p8 = scmp.lt.u32.totalorder %s248_s2, %s340_s3 }
 0x10d   :  { %p254_p9 = pnand %p252_p8, %p249_p7 }
 0x10f   :  { %257 = shalt.err (!%p254_p9)
}
 0x110   :  { %152 = dma.vmem_to_hbm [thread:$0]  %s147_s12, 256, %s340_s3, [#allocation4], %s265_s22, %s265_s22, %s266_s23  }
 0x111   :  { %262 = dma.done.wait [#allocation4], 256  }
 0x112   :  { %263 = vsyncadd [#allocation4], 4294967040 }
 0x113   :  { %156 = vsyncpa [#allocation3], 1 }
 0x114   :  { %157 = vsyncpa [#allocation6], 1 }
 0x115   :  { %158 = vsyncpa [#allocation4], 1 }

</bundles_post_ra>
